<compile_context>
chip_gen: v5e
topology: v5e:2x2
jax: 0.10.0
libtpu: 0.0.40
codegen_flags: <defaults>
</compile_context>

<pallas_src>
import functools

import jax
import jax.numpy as jnp
from jax.experimental import pallas as pl
from jax.experimental.pallas import tpu as pltpu


def _tem_agg(h, w_fc, wt_row, t_src_row, t_dst_col, *, use_residual, apply_elu):
    """One Tem_Agg_Layer over a dense complete-bipartite block (traced inline)."""
    # z = fc(h) -- bf16 MXU operands, f32 accumulation.
    z = jnp.dot(h.astype(jnp.bfloat16), w_fc.astype(jnp.bfloat16),
                preferred_element_type=jnp.float32)                  # (N_src, D)

    # temporal_fc(z): lane reduction instead of a 1-column MXU matmul.
    s_col = jnp.sum(z * wt_row, axis=-1, keepdims=True)              # (N_src, 1)
    s_row = jnp.transpose(s_col)                                     # (1, N_src) small xpose

    n_dst = t_dst_col.shape[0]

    # e[i, j] = -|t_src[j] - t_dst[i]|   (timestamps pre-oriented, no transposes).
    e = -jnp.abs(t_src_row - t_dst_col)                              # (N_dst, N_src)

    # logits = exp(temporal_fc(z)[j] * e[i,j] / 500)   (torch softmaxes the exp(.))
    logits = jnp.exp(s_row * e * (1.0 / 500.0))                      # (N_dst, N_src)

    # Unnormalized softmax; denominator folded in after the aggregation matmul.
    m = jnp.max(logits, axis=1, keepdims=True)
    p = jnp.exp(logits - m)                                          # (N_dst, N_src)
    denom = jnp.sum(p, axis=1, keepdims=True)                        # (N_dst, 1)

    h_num = jnp.dot(p.astype(jnp.bfloat16), z.astype(jnp.bfloat16),
                    preferred_element_type=jnp.float32)              # (N_dst, D)
    h_out = h_num * pl.reciprocal(denom, approx=True)

    if use_residual:
        h_out = h_out + z[:n_dst, :]
    if apply_elu:
        # F.elu(alpha=1.0); exp(x)-1 kept (expm1 lowering not guaranteed on Mosaic).
        h_out = jnp.where(h_out > 0, h_out, jnp.exp(h_out) - 1.0)
    return h_out


def _gnn_fused_kernel(feat_ref, wfc1_ref, wt1_ref, tsrc0_ref, tdst0c_ref,
                      wfc2_ref, wt2_ref, tdst0r_ref, tdst1c_ref, out_ref,
                      *, use_residual):
    # Layer 1 (+ fused ELU); h1 stays on-chip, never written to HBM.
    h1 = _tem_agg(feat_ref[...], wfc1_ref[...], wt1_ref[...],
                  tsrc0_ref[...], tdst0c_ref[...],
                  use_residual=use_residual, apply_elu=True)
    # Layer 2: block-1 src nodes are block-0 dst nodes (src features = h1).
    out_ref[...] = _tem_agg(h1, wfc2_ref[...], wt2_ref[...],
                            tdst0r_ref[...], tdst1c_ref[...],
                            use_residual=use_residual, apply_elu=False)


def gnn_forward(params, feat0, t_src0, t_dst0, t_dst1, *, use_residual=False):
    """Fused 2-layer GNN forward over dense complete-bipartite blocks.

    feat0  : (N_src0, in_dim)   block-0 src node features
    t_src0 : (N_src0, 1)        block-0 src timestamps
    t_dst0 : (N_dst0, 1)        block-0 dst == block-1 src timestamps (prefix of src)
    t_dst1 : (N_dst1, 1)        block-1 dst timestamps (prefix of t_dst0)
    """
    n_src0, in_dim = feat0.shape
    hid_dim = params["w_fc1"].shape[1]
    out_dim = params["w_fc2"].shape[1]
    n_dst0 = t_dst0.shape[0]
    n_dst1 = t_dst1.shape[0]

    lane = 128
    rpad = lambda d: ((d + lane - 1) // lane) * lane
    in_p, hid_p, out_p = rpad(in_dim), rpad(hid_dim), rpad(out_dim)

    # Zero-pad feature dims to 128 multiples (exact for bias-free Linear).
    feat_p = jnp.pad(feat0, ((0, 0), (0, in_p - in_dim)))
    wfc1_p = jnp.pad(params["w_fc1"], ((0, in_p - in_dim), (0, hid_p - hid_dim)))
    wt1_row = jnp.pad(params["w_t1"].T, ((0, 0), (0, hid_p - hid_dim)))    # (1, hid_p)
    wfc2_p = jnp.pad(params["w_fc2"], ((0, hid_p - hid_dim), (0, out_p - out_dim)))
    wt2_row = jnp.pad(params["w_t2"].T, ((0, 0), (0, out_p - out_dim)))    # (1, out_p)

    # Lane-major src timestamps / column dst timestamps (layout plumbing here, not in kernel).
    t_src0_row = t_src0.reshape(1, n_src0)
    t_dst0_col = t_dst0.reshape(n_dst0, 1)
    t_dst0_row = t_dst0.reshape(1, n_dst0)   # reused as layer-2 src timestamps
    t_dst1_col = t_dst1.reshape(n_dst1, 1)

    kernel = functools.partial(_gnn_fused_kernel, use_residual=use_residual)

    out_padded = pl.pallas_call(
        kernel,
        out_shape=jax.ShapeDtypeStruct((n_dst1, out_p), jnp.float32),
        grid=(1,),
        in_specs=[
            pl.BlockSpec((n_src0, in_p), lambda i: (0, 0)),
            pl.BlockSpec((in_p, hid_p), lambda i: (0, 0)),
            pl.BlockSpec((1, hid_p), lambda i: (0, 0)),
            pl.BlockSpec((1, n_src0), lambda i: (0, 0)),
            pl.BlockSpec((n_dst0, 1), lambda i: (0, 0)),
            pl.BlockSpec((hid_p, out_p), lambda i: (0, 0)),
            pl.BlockSpec((1, out_p), lambda i: (0, 0)),
            pl.BlockSpec((1, n_dst0), lambda i: (0, 0)),
            pl.BlockSpec((n_dst1, 1), lambda i: (0, 0)),
        ],
        out_specs=pl.BlockSpec((n_dst1, out_p), lambda i: (0, 0)),
        compiler_params=pltpu.CompilerParams(
            dimension_semantics=("arbitrary",),
            vmem_limit_bytes=32 * 1024 * 1024),
    )(feat_p, wfc1_p, wt1_row, t_src0_row, t_dst0_col,
      wfc2_p, wt2_row, t_dst0_row, t_dst1_col)

    return out_padded[:, :out_dim]


def init_params(key, in_dim, hidden_dim, out_dim):
    """Param init mirroring the torch module (weights stored pre-transposed)."""
    k1, k2, k3, k4 = jax.random.split(key, 4)
    gain = jnp.sqrt(2.0)   # calculate_gain('relu')

    def xavier_normal(k, fan_in, fan_out):
        std = gain * jnp.sqrt(2.0 / (fan_in + fan_out))
        return std * jax.random.normal(k, (fan_in, fan_out), jnp.float32)

    def default_linear(k, fan_in, fan_out):
        bound = 1.0 / jnp.sqrt(float(fan_in))
        return jax.random.uniform(k, (fan_in, fan_out), jnp.float32, -bound, bound)

    return {
        "w_fc1": xavier_normal(k1, in_dim, hidden_dim),     # layer1.fc.weight.T
        "w_t1": default_linear(k2, hidden_dim, 1),          # layer1.temporal_fc.weight.T
        "w_fc2": xavier_normal(k3, hidden_dim, out_dim),    # layer2.fc.weight.T
        "w_t2": default_linear(k4, out_dim, 1),             # layer2.temporal_fc.weight.T
    }


def _gnn_reference(params, feat0, t_src0, t_dst0, t_dst1, *, use_residual=False):
    """Pure-JAX f32 reference for correctness checking."""
    def layer(h, w_fc, w_t, t_src, t_dst, apply_elu):
        z = h @ w_fc
        s = z @ w_t                                  # (N_src, 1)
        e = -jnp.abs(t_src.T - t_dst)                # (N_dst, N_src)
        logits = jnp.exp(s.T * e / 500.0)
        alpha = jax.nn.softmax(logits, axis=1)
        out = alpha @ z
        if use_residual:
            out = out + z[:t_dst.shape[0]]
        if apply_elu:
            out = jnp.where(out > 0, out, jnp.exp(out) - 1.0)
        return out

    h1 = layer(feat0, params["w_fc1"], params["w_t1"], t_src0, t_dst0, True)
    return layer(h1, params["w_fc2"], params["w_t2"], t_dst0, t_dst1, False)


if __name__ == "__main__":
    key = jax.random.PRNGKey(0)
    k_feat, k_time, k_param = jax.random.split(key, 3)

    # Small synthetic 2-layer block structure (dense complete-bipartite blocks).
    N_SRC0, N_DST0, N_DST1 = 16, 8, 4
    IN_DIM, HID_DIM, OUT_DIM = 16, 32, 8

    feat0 = jax.random.normal(k_feat, (N_SRC0, IN_DIM), jnp.float32)
    t_src0 = jax.random.uniform(k_time, (N_SRC0, 1), jnp.float32,
                                minval=0.0, maxval=1000.0)
    t_dst0 = t_src0[:N_DST0]   # DGL block convention: dst nodes lead the src nodes
    t_dst1 = t_dst0[:N_DST1]

    params = init_params(k_param, IN_DIM, HID_DIM, OUT_DIM)

    out = gnn_forward(params, feat0, t_src0, t_dst0, t_dst1, use_residual=False)
    jax.block_until_ready(out)

    assert out.shape == (N_DST1, OUT_DIM) and out.dtype == jnp.float32
    assert bool(jnp.all(jnp.isfinite(out)))
    ref = _gnn_reference(params, feat0, t_src0, t_dst0, t_dst1, use_residual=False)
    # Loose tolerance: kernel uses bf16 MXU operands + approx reciprocal.
    assert bool(jnp.allclose(out, ref, rtol=1e-1, atol=1e-1))
    print("KERNEL_OK")
</pallas_src>

<mosaic_0001>
module attributes {stable_mosaic.version = 11 : i64} {
  func.func @_gnn_fused_kernel(%arg0: i32, %arg1: memref<16x128xf32, #tpu.memory_space<vmem>>, %arg2: memref<128x128xf32, #tpu.memory_space<vmem>>, %arg3: memref<1x128xf32, #tpu.memory_space<vmem>>, %arg4: memref<1x16xf32, #tpu.memory_space<vmem>>, %arg5: memref<8x1xf32, #tpu.memory_space<vmem>>, %arg6: memref<128x128xf32, #tpu.memory_space<vmem>>, %arg7: memref<1x128xf32, #tpu.memory_space<vmem>>, %arg8: memref<1x8xf32, #tpu.memory_space<vmem>>, %arg9: memref<4x1xf32, #tpu.memory_space<vmem>>, %arg10: memref<4x128xf32, #tpu.memory_space<vmem>>) attributes {dimension_semantics = [#tpu.dimension_semantics<arbitrary>], iteration_bounds = array<i64: 1>, scalar_prefetch = 0 : i64, scratch_operands = 0 : i64, tpu.core_type = #tpu.core_type<tc>, window_params = [{pipeline_mode = #tpu.pipeline_mode<synchronous>, transform_indices = @transform_0, window_bounds = array<i64: 16, 128>}, {pipeline_mode = #tpu.pipeline_mode<synchronous>, transform_indices = @transform_1, window_bounds = array<i64: 128, 128>}, {pipeline_mode = #tpu.pipeline_mode<synchronous>, transform_indices = @transform_2, window_bounds = array<i64: 1, 128>}, {pipeline_mode = #tpu.pipeline_mode<synchronous>, transform_indices = @transform_3, window_bounds = array<i64: 1, 16>}, {pipeline_mode = #tpu.pipeline_mode<synchronous>, transform_indices = @transform_4, window_bounds = array<i64: 8, 1>}, {pipeline_mode = #tpu.pipeline_mode<synchronous>, transform_indices = @transform_5, window_bounds = array<i64: 128, 128>}, {pipeline_mode = #tpu.pipeline_mode<synchronous>, transform_indices = @transform_6, window_bounds = array<i64: 1, 128>}, {pipeline_mode = #tpu.pipeline_mode<synchronous>, transform_indices = @transform_7, window_bounds = array<i64: 1, 8>}, {pipeline_mode = #tpu.pipeline_mode<synchronous>, transform_indices = @transform_8, window_bounds = array<i64: 4, 1>}, {pipeline_mode = #tpu.pipeline_mode<synchronous>, transform_indices = @transform_9, window_bounds = array<i64: 4, 128>}]} {
    %c0 = arith.constant 0 : index
    %c0_0 = arith.constant 0 : index
    %0 = vector.load %arg1[%c0, %c0_0] : memref<16x128xf32, #tpu.memory_space<vmem>>, vector<16x128xf32>
    %c0_1 = arith.constant 0 : index
    %c0_2 = arith.constant 0 : index
    %1 = vector.load %arg2[%c0_1, %c0_2] : memref<128x128xf32, #tpu.memory_space<vmem>>, vector<128x128xf32>
    %c0_3 = arith.constant 0 : index
    %c0_4 = arith.constant 0 : index
    %2 = vector.load %arg3[%c0_3, %c0_4] : memref<1x128xf32, #tpu.memory_space<vmem>>, vector<1x128xf32>
    %c0_5 = arith.constant 0 : index
    %c0_6 = arith.constant 0 : index
    %3 = vector.load %arg4[%c0_5, %c0_6] : memref<1x16xf32, #tpu.memory_space<vmem>>, vector<1x16xf32>
    %c0_7 = arith.constant 0 : index
    %c0_8 = arith.constant 0 : index
    %4 = vector.load %arg5[%c0_7, %c0_8] : memref<8x1xf32, #tpu.memory_space<vmem>>, vector<8x1xf32>
    %5 = arith.truncf %0 : vector<16x128xf32> to vector<16x128xbf16>
    %6 = arith.truncf %1 : vector<128x128xf32> to vector<128x128xbf16>
    %cst = arith.constant dense<0.000000e+00> : vector<16x128xf32>
    %7 = tpu.matmul %5, %6, %cst {dimension_numbers = #tpu.dot_dimension_numbers<[1], [0], [0], [1], [0, 0, 1, 1], [], []>} : vector<16x128xbf16>, vector<128x128xbf16>, vector<16x128xf32> -> vector<16x128xf32>
    %8 = vector.broadcast %2 : vector<1x128xf32> to vector<16x128xf32>
    %9 = arith.mulf %7, %8 : vector<16x128xf32>
    %cst_9 = arith.constant dense<0.000000e+00> : vector<16xf32>
    %10 = vector.multi_reduction <add>, %9, %cst_9 [1] : vector<16x128xf32> to vector<16xf32>
    %11 = vector.shape_cast %10 : vector<16xf32> to vector<16x1xf32>
    %12 = tpu.transpose %11, [1, 0] : vector<16x1xf32> -> vector<1x16xf32>
    %13 = vector.broadcast %3 : vector<1x16xf32> to vector<8x16xf32>
    %14 = vector.broadcast %4 : vector<8x1xf32> to vector<8x16xf32>
    %15 = arith.subf %13, %14 : vector<8x16xf32>
    %16 = math.absf %15 : vector<8x16xf32>
    %cst_10 = arith.constant 0.000000e+00 : f32
    %17 = vector.broadcast %cst_10 : f32 to vector<8x16xf32>
    %18 = arith.subf %17, %16 : vector<8x16xf32>
    %19 = vector.broadcast %12 : vector<1x16xf32> to vector<8x16xf32>
    %20 = arith.mulf %19, %18 : vector<8x16xf32>
    %cst_11 = arith.constant 2.000000e-03 : f32
    %21 = vector.broadcast %cst_11 : f32 to vector<8x16xf32>
    %22 = arith.mulf %20, %21 : vector<8x16xf32>
    %23 = math.exp %22 : vector<8x16xf32>
    %cst_12 = arith.constant dense<0xFF800000> : vector<8xf32>
    %24 = vector.multi_reduction <maximumf>, %23, %cst_12 [1] : vector<8x16xf32> to vector<8xf32>
    %25 = vector.shape_cast %24 : vector<8xf32> to vector<8x1xf32>
    %26 = vector.broadcast %25 : vector<8x1xf32> to vector<8x16xf32>
    %27 = arith.subf %23, %26 : vector<8x16xf32>
    %28 = math.exp %27 : vector<8x16xf32>
    %cst_13 = arith.constant dense<0.000000e+00> : vector<8xf32>
    %29 = vector.multi_reduction <add>, %28, %cst_13 [1] : vector<8x16xf32> to vector<8xf32>
    %30 = vector.shape_cast %29 : vector<8xf32> to vector<8x1xf32>
    %31 = arith.truncf %28 : vector<8x16xf32> to vector<8x16xbf16>
    %32 = arith.truncf %7 : vector<16x128xf32> to vector<16x128xbf16>
    %cst_14 = arith.constant dense<0.000000e+00> : vector<8x128xf32>
    %33 = tpu.matmul %31, %32, %cst_14 {dimension_numbers = #tpu.dot_dimension_numbers<[1], [0], [0], [1], [0, 0, 1, 1], [], []>} : vector<8x16xbf16>, vector<16x128xbf16>, vector<8x128xf32> -> vector<8x128xf32>
    %34 = tpu.reciprocal %30 {approx = true} : vector<8x1xf32> -> vector<8x1xf32>
    %35 = vector.broadcast %34 : vector<8x1xf32> to vector<8x128xf32>
    %36 = arith.mulf %33, %35 : vector<8x128xf32>
    %cst_15 = arith.constant 0.000000e+00 : f32
    %37 = vector.broadcast %cst_15 : f32 to vector<8x128xf32>
    %38 = arith.cmpf ogt, %36, %37 : vector<8x128xf32>
    %39 = math.exp %36 : vector<8x128xf32>
    %cst_16 = arith.constant 1.000000e+00 : f32
    %40 = vector.broadcast %cst_16 : f32 to vector<8x128xf32>
    %41 = arith.subf %39, %40 : vector<8x128xf32>
    %42 = arith.select %38, %36, %41 : vector<8x128xi1>, vector<8x128xf32>
    %c0_17 = arith.constant 0 : index
    %c0_18 = arith.constant 0 : index
    %43 = vector.load %arg6[%c0_17, %c0_18] : memref<128x128xf32, #tpu.memory_space<vmem>>, vector<128x128xf32>
    %c0_19 = arith.constant 0 : index
    %c0_20 = arith.constant 0 : index
    %44 = vector.load %arg7[%c0_19, %c0_20] : memref<1x128xf32, #tpu.memory_space<vmem>>, vector<1x128xf32>
    %c0_21 = arith.constant 0 : index
    %c0_22 = arith.constant 0 : index
    %45 = vector.load %arg8[%c0_21, %c0_22] : memref<1x8xf32, #tpu.memory_space<vmem>>, vector<1x8xf32>
    %c0_23 = arith.constant 0 : index
    %c0_24 = arith.constant 0 : index
    %46 = vector.load %arg9[%c0_23, %c0_24] : memref<4x1xf32, #tpu.memory_space<vmem>>, vector<4x1xf32>
    %47 = arith.truncf %42 : vector<8x128xf32> to vector<8x128xbf16>
    %48 = arith.truncf %43 : vector<128x128xf32> to vector<128x128xbf16>
    %cst_25 = arith.constant dense<0.000000e+00> : vector<8x128xf32>
    %49 = tpu.matmul %47, %48, %cst_25 {dimension_numbers = #tpu.dot_dimension_numbers<[1], [0], [0], [1], [0, 0, 1, 1], [], []>} : vector<8x128xbf16>, vector<128x128xbf16>, vector<8x128xf32> -> vector<8x128xf32>
    %50 = vector.broadcast %44 : vector<1x128xf32> to vector<8x128xf32>
    %51 = arith.mulf %49, %50 : vector<8x128xf32>
    %cst_26 = arith.constant dense<0.000000e+00> : vector<8xf32>
    %52 = vector.multi_reduction <add>, %51, %cst_26 [1] : vector<8x128xf32> to vector<8xf32>
    %53 = vector.shape_cast %52 : vector<8xf32> to vector<8x1xf32>
    %54 = tpu.transpose %53, [1, 0] : vector<8x1xf32> -> vector<1x8xf32>
    %55 = vector.broadcast %45 : vector<1x8xf32> to vector<4x8xf32>
    %56 = vector.broadcast %46 : vector<4x1xf32> to vector<4x8xf32>
    %57 = arith.subf %55, %56 : vector<4x8xf32>
    %58 = math.absf %57 : vector<4x8xf32>
    %cst_27 = arith.constant 0.000000e+00 : f32
    %59 = vector.broadcast %cst_27 : f32 to vector<4x8xf32>
    %60 = arith.subf %59, %58 : vector<4x8xf32>
    %61 = vector.broadcast %54 : vector<1x8xf32> to vector<4x8xf32>
    %62 = arith.mulf %61, %60 : vector<4x8xf32>
    %cst_28 = arith.constant 2.000000e-03 : f32
    %63 = vector.broadcast %cst_28 : f32 to vector<4x8xf32>
    %64 = arith.mulf %62, %63 : vector<4x8xf32>
    %65 = math.exp %64 : vector<4x8xf32>
    %cst_29 = arith.constant dense<0xFF800000> : vector<4xf32>
    %66 = vector.multi_reduction <maximumf>, %65, %cst_29 [1] : vector<4x8xf32> to vector<4xf32>
    %67 = vector.shape_cast %66 : vector<4xf32> to vector<4x1xf32>
    %68 = vector.broadcast %67 : vector<4x1xf32> to vector<4x8xf32>
    %69 = arith.subf %65, %68 : vector<4x8xf32>
    %70 = math.exp %69 : vector<4x8xf32>
    %cst_30 = arith.constant dense<0.000000e+00> : vector<4xf32>
    %71 = vector.multi_reduction <add>, %70, %cst_30 [1] : vector<4x8xf32> to vector<4xf32>
    %72 = vector.shape_cast %71 : vector<4xf32> to vector<4x1xf32>
    %73 = arith.truncf %70 : vector<4x8xf32> to vector<4x8xbf16>
    %74 = arith.truncf %49 : vector<8x128xf32> to vector<8x128xbf16>
    %cst_31 = arith.constant dense<0.000000e+00> : vector<4x128xf32>
    %75 = tpu.matmul %73, %74, %cst_31 {dimension_numbers = #tpu.dot_dimension_numbers<[1], [0], [0], [1], [0, 0, 1, 1], [], []>} : vector<4x8xbf16>, vector<8x128xbf16>, vector<4x128xf32> -> vector<4x128xf32>
    %76 = tpu.reciprocal %72 {approx = true} : vector<4x1xf32> -> vector<4x1xf32>
    %77 = vector.broadcast %76 : vector<4x1xf32> to vector<4x128xf32>
    %78 = arith.mulf %75, %77 : vector<4x128xf32>
    %c0_32 = arith.constant 0 : index
    %c0_33 = arith.constant 0 : index
    %79 = vector.load %arg10[%c0_32, %c0_33] : memref<4x128xf32, #tpu.memory_space<vmem>>, vector<4x128xf32>
    tpu.vector_store %arg10[%c0_32, %c0_33], %78 {strides = array<i32>} : memref<4x128xf32, #tpu.memory_space<vmem>>, vector<4x128xf32>,
    return
  }
  func.func @transform_0(%arg0: i32) -> (i32, i32) {
    %c0_i32 = arith.constant 0 : i32
    %c0_i32_0 = arith.constant 0 : i32
    %c0_i32_1 = arith.constant 0 : i32
    return %c0_i32, %c0_i32_0 : i32, i32
  }
  func.func @transform_1(%arg0: i32) -> (i32, i32) {
    %c0_i32 = arith.constant 0 : i32
    %c0_i32_0 = arith.constant 0 : i32
    %c0_i32_1 = arith.constant 0 : i32
    return %c0_i32, %c0_i32_0 : i32, i32
  }
  func.func @transform_2(%arg0: i32) -> (i32, i32) {
    %c0_i32 = arith.constant 0 : i32
    %c0_i32_0 = arith.constant 0 : i32
    %c0_i32_1 = arith.constant 0 : i32
    return %c0_i32, %c0_i32_0 : i32, i32
  }
  func.func @transform_3(%arg0: i32) -> (i32, i32) {
    %c0_i32 = arith.constant 0 : i32
    %c0_i32_0 = arith.constant 0 : i32
    %c0_i32_1 = arith.constant 0 : i32
    return %c0_i32, %c0_i32_0 : i32, i32
  }
  func.func @transform_4(%arg0: i32) -> (i32, i32) {
    %c0_i32 = arith.constant 0 : i32
    %c0_i32_0 = arith.constant 0 : i32
    %c0_i32_1 = arith.constant 0 : i32
    return %c0_i32, %c0_i32_0 : i32, i32
  }
  func.func @transform_5(%arg0: i32) -> (i32, i32) {
    %c0_i32 = arith.constant 0 : i32
    %c0_i32_0 = arith.constant 0 : i32
    %c0_i32_1 = arith.constant 0 : i32
    return %c0_i32, %c0_i32_0 : i32, i32
  }
  func.func @transform_6(%arg0: i32) -> (i32, i32) {
    %c0_i32 = arith.constant 0 : i32
    %c0_i32_0 = arith.constant 0 : i32
    %c0_i32_1 = arith.constant 0 : i32
    return %c0_i32, %c0_i32_0 : i32, i32
  }
  func.func @transform_7(%arg0: i32) -> (i32, i32) {
    %c0_i32 = arith.constant 0 : i32
    %c0_i32_0 = arith.constant 0 : i32
    %c0_i32_1 = arith.constant 0 : i32
    return %c0_i32, %c0_i32_0 : i32, i32
  }
  func.func @transform_8(%arg0: i32) -> (i32, i32) {
    %c0_i32 = arith.constant 0 : i32
    %c0_i32_0 = arith.constant 0 : i32
    %c0_i32_1 = arith.constant 0 : i32
    return %c0_i32, %c0_i32_0 : i32, i32
  }
  func.func @transform_9(%arg0: i32) -> (i32, i32) {
    %c0_i32 = arith.constant 0 : i32
    %c0_i32_0 = arith.constant 0 : i32
    %c0_i32_1 = arith.constant 0 : i32
    return %c0_i32, %c0_i32_0 : i32, i32
  }
}

</mosaic_0001>

<bundles_post_ra>
// kernel: tpu_custom_call.1
= control target key start
LH: loop header
LB: loop body
LE: loop exit
PB: predicated region body
PF: predicated region fallthrough
CT: control target
= control target key end

     0   :  { %14 = vsyncpa [#allocation3], 0  ;;  %s593_s0 = inlined_call_operand.hbm [shape: f32[16,128], index: 0, kind: input, shape index: {}]   ;;  %s594_s1 = inlined_call_operand.hbm [shape: f32[128,128], index: 1, kind: input, shape index: {}]   ;;  %s595_s2 = inlined_call_operand.vmem [shape: f32[1,128], index: 2, kind: input, shape index: {}]   ;;  %s596_s3 = inlined_call_operand.vmem [shape: f32[1,16], index: 3, kind: input, shape index: {}]   ;;  %s597_s4 = inlined_call_operand.vmem [shape: f32[8,1], index: 4, kind: input, shape index: {}]   ;;  %s598_s5 = inlined_call_operand.hbm [shape: f32[128,128], index: 5, kind: input, shape index: {}]   ;;  %s599_s6 = inlined_call_operand.vmem [shape: f32[1,128], index: 6, kind: input, shape index: {}]   ;;  %s600_s7 = inlined_call_operand.vmem [shape: f32[1,8], index: 7, kind: input, shape index: {}]   ;;  %s601_s8 = inlined_call_operand.vmem [shape: f32[4,1], index: 8, kind: input, shape index: {}]   ;;  %s602_s9 = inlined_call_operand.hbm [shape: f32[4,128], index: 9, kind: output, shape index: {}]  }
   0x1   :  { %15 = vsyncpa [#allocation6], 0 }
   0x2   :  { %16 = vsyncpa [#allocation4], 0  ;;  %s34_s11 = sshll.u32 %s594_s1, 4  ;;  %s500_s12 = smov [#allocation5]   ;;  %s35_s11 = int_to_ptr.hbm [resolvable:$true] %s34_s11 }
   0x3   :  { %s36_s13 = sshll.u32 %s500_s12, 4  ;;  %s21_s16 = sshll.u32 %s593_s0, 4  ;;  %s37_s13 = int_to_ptr.vmem [resolvable:$true] %s36_s13  ;;  %s22_s16 = int_to_ptr.hbm [resolvable:$true] %s21_s16 }
   0x4   :  { %s501_s17 = smov 128   ;;  %s502_s18 = smov 8  }
   0x5   :  { %42 = dma.hbm_to_vmem [thread:$0]  %s35_s11, 2048, %s37_s13, [#allocation6], %s501_s17, %s501_s17, %s502_s18  }
   0x6   :  { %s503_s19 = smov [#allocation2]   ;;  %s53_s23 = sshll.u32 %s598_s5, 4  ;;  %s54_s23 = int_to_ptr.hbm [resolvable:$true] %s53_s23 }
   0x7   :  { %s23_s20 = sshll.u32 %s503_s19, 4  ;;  %s504_s1 = smov [#allocation7]   ;;  %s24_s20 = int_to_ptr.vmem [resolvable:$true] %s23_s20 }
   0x8   :  { %29 = dma.hbm_to_vmem [thread:$0]  %s22_s16, 256, %s24_s20, [#allocation3], %s501_s17, %s501_s17, %s502_s18  }
   0x9   :  { %s55_s24 = sshll.u32 %s504_s1, 4  ;;  %s56_s24 = int_to_ptr.vmem [resolvable:$true] %s55_s24 }
   0xa   :  { %61 = dma.hbm_to_vmem [thread:$0]  %s54_s23, 2048, %s56_s24, [#allocation6], %s501_s17, %s501_s17, %s502_s18  }
   0xb   :  { %494 = dma.done.wait [#allocation3], 256  }
   0xc   :  { %495 = vsyncadd [#allocation3], 4294967040 }
   0xd   :  { %496 = dma.done.wait [#allocation6], 4096  }
   0xe   :  { %497 = vsyncadd [#allocation6], 4294963200  ;;  %v97_v0 = vld [vmem:[#allocation5 + $0x70] sm:$0xff]  ;;  %v98_v1 = vld [vmem:[#allocation5 + $0x78] sm:$0xff]  ;;  %v505_v28 = vmov 0   ;;  %vm182_vm0 = vcmask 130048  }
   0xf   :  { %v95_v2 = vld [vmem:[#allocation5 + $0x60] sm:$0xff]  ;;  %v110_v3 = vpack.c.bf16 %v98_v1, %v97_v0  ;;  %v96_v4 = vld [vmem:[#allocation5 + $0x68] sm:$0xff]  ;;  %v93_v6 = vld [vmem:[#allocation5 + $0x50] sm:$0xff]  ;;  %377 = vset.pattern.permute.xlu1 %v505_v28  ;;  %378 = vset.pattern.permute.xlu2 %v505_v28  ;;  %vm328_vm2 = vcmask 1043456   ;;  %vm312_vm3 = vcmask 60416   ;;  %vm324_vm4 = vcmask 64512  }
  0x10   :  { %v109_v5 = vpack.c.bf16 %v96_v4, %v95_v2  ;;  %v94_v7 = vld [vmem:[#allocation5 + $0x58] sm:$0xff]  ;;  %v91_v9 = vld [vmem:[#allocation5 + $0x40] sm:$0xff]  ;;  %v92_v10 = vld [vmem:[#allocation5 + $0x48] sm:$0xff]  ;;  %s355_s12 = sshll.u32 %s602_s9, 4  ;;  %s356_s12 = int_to_ptr.hbm [resolvable:$true] %s355_s12 }
  0x11   :  { %111 = vmatpush.bf16.msra.mxu0 %v110_v3  ;;  %v108_v8 = vpack.c.bf16 %v94_v7, %v93_v6  ;;  %v107_v11 = vpack.c.bf16 %v92_v10, %v91_v9  ;;  %v89_v12 = vld [vmem:[#allocation5 + $0x30] sm:$0xff]  ;;  %v90_v13 = vld [vmem:[#allocation5 + $0x38] sm:$0xff]  ;;  %v87_v15 = vld [vmem:[#allocation5 + $0x20] sm:$0xff] }
  0x12   :  { %v106_v14 = vpack.c.bf16 %v90_v13, %v89_v12  ;;  %v88_v16 = vld [vmem:[#allocation5 + $0x28] sm:$0xff]  ;;  %v85_v18 = vld [vmem:[#allocation5 + $0x10] sm:$0xff]  ;;  %v86_v19 = vld [vmem:[#allocation5 + $0x18] sm:$0xff] }
  0x13   :  { %v105_v17 = vpack.c.bf16 %v88_v16, %v87_v15  ;;  %v104_v20 = vpack.c.bf16 %v86_v19, %v85_v18  ;;  %v83_v21 = vld [vmem:[#allocation5] sm:$0xff]  ;;  %v84_v22 = vld [vmem:[#allocation5 + $0x8] sm:$0xff]  ;;  %v81_v24 = vld [vmem:[#allocation2] sm:$0xff] }
  0x14   :  { %v103_v23 = vpack.c.bf16 %v84_v22, %v83_v21  ;;  %v82_v25 = vld [vmem:[#allocation2 + $0x8] sm:$0xff]  ;;  %v101_v27 = vld [vmem:[%s597_s4] sm:$0xff]  ;;  %v229_v58 = vld [vmem:[#allocation7 + $0x60] sm:$0xff] }
  0x15   :  { %112 = vmatpush.bf16.msra.mxu0 %v109_v5  ;;  %v102_v26 = vpack.c.bf16 %v82_v25, %v81_v24  ;;  %171 = vperm.xlu1 %377, %v101_v27   ;;  %v380_v29 = vld [vmem:[%s595_s2] ss:$0 sm:$0xff]  ;;  %v232_v50 = vld [vmem:[#allocation7 + $0x78] sm:$0xff]  ;;  %v230_v59 = vld [vmem:[#allocation7 + $0x68] sm:$0xff] }
  0x16   :  { %v381_v37 = vld [vmem:[%s596_s3] ss:$0 sm:$0xff]  ;;  %v243_v60 = vpack.c.bf16 %v230_v59, %v229_v58  ;;  %v228_v62 = vld [vmem:[#allocation7 + $0x58] sm:$0xff]  ;;  %v225_v0 = vld [vmem:[#allocation7 + $0x40] sm:$0xff] }
  0x17   :  { %v231_v49 = vld [vmem:[#allocation7 + $0x70] sm:$0xff]  ;;  %v226_v1 = vld [vmem:[#allocation7 + $0x48] sm:$0xff]  ;;  %v224_v4 = vld [vmem:[#allocation7 + $0x38] sm:$0xff] }
  0x18   :  { %v244_v51 = vpack.c.bf16 %v232_v50, %v231_v49  ;;  %v227_v61 = vld [vmem:[#allocation7 + $0x50] sm:$0xff]  ;;  %v241_v2 = vpack.c.bf16 %v226_v1, %v225_v0  ;;  %v221_v6 = vld [vmem:[#allocation7 + $0x20] sm:$0xff]  ;;  %v222_v7 = vld [vmem:[#allocation7 + $0x28] sm:$0xff] }
  0x19   :  { %113 = vmatpush.bf16.msra.mxu0 %v108_v8  ;;  %v242_v63 = vpack.c.bf16 %v228_v62, %v227_v61  ;;  %v223_v3 = vld [vmem:[#allocation7 + $0x30] sm:$0xff]  ;;  %v239_v8 = vpack.c.bf16 %v222_v7, %v221_v6  ;;  %v220_v10 = vld [vmem:[#allocation7 + $0x18] sm:$0xff]  ;;  %v217_v12 = vld [vmem:[#allocation7] sm:$0xff] }
  0x1a   :  { %245 = vmatpush.bf16.msra.mxu2 %v244_v51  ;;  %v240_v5 = vpack.c.bf16 %v224_v4, %v223_v3  ;;  %v219_v9 = vld [vmem:[#allocation7 + $0x10] sm:$0xff]  ;;  %v218_v13 = vld [vmem:[#allocation7 + $0x8] sm:$0xff] }
  0x1b   :  { %v382_v25 = vld [vmem:[%s599_s6] ss:$0 sm:$0xff]  ;;  %s506_s6 = smov [#allocation8]  }
  0x1d   :  { %114 = vmatpush.bf16.msra.mxu0 %v107_v11  ;;  %v238_v11 = vpack.c.bf16 %v220_v10, %v219_v9 }
  0x1e   :  { %246 = vmatpush.bf16.msra.mxu2 %v243_v60 }
  0x21   :  { %115 = vmatpush.bf16.msra.mxu0 %v106_v14  ;;  %v237_v14 = vpack.c.bf16 %v218_v13, %v217_v12 }
  0x22   :  { %247 = vmatpush.bf16.msra.mxu2 %v242_v63 }
  0x25   :  { %116 = vmatpush.bf16.msra.mxu0 %v105_v17 }
  0x26   :  { %248 = vmatpush.bf16.msra.mxu2 %v241_v2 }
  0x29   :  { %117 = vmatpush.bf16.msra.mxu0 %v104_v20 }
  0x2a   :  { %249 = vmatpush.bf16.msra.mxu2 %v240_v5 }
  0x2d   :  { %118 = vmatpush.bf16.msra.mxu0 %v103_v23 }
  0x2e   :  { %250 = vmatpush.bf16.msra.mxu2 %v239_v8 }
  0x30   :  { %119 = vmatmul.bf16.vlgmr.msra.gmra.mxu0 %v102_v26 }
  0x32   :  { %251 = vmatpush.bf16.msra.mxu2 %v238_v11 }
  0x36   :  { %252 = vmatpush.bf16.msra.mxu2 %v237_v14 }
  0x87   :  { %v172_v38 = vpop.permute.xlu1 %171 }
  0x88   :  { %v174_v39 = vsub.f32 %v381_v37, %v172_v38 }
  0x8a   :  { %v175_v40 = vand.u32 2147483647, %v174_v39 }
  0x8c   :  { %v176_v42 = vsub.f32 0.0, %v175_v40 }
  0xad   :  { %v120_v30 = vpop.f32.mrf.mxu0 }
  0xae   :  { %v128_v31 = vmul.f32 %v380_v29, %v120_v30 }
  0xb0   :  { %130 = vadd.xlane.f32.xlu0 %v128_v31 }
  0xb5   :  { %v122_v32 = vpop.f32.mrf.mxu0 }
  0xb6   :  { %v129_v33 = vmul.f32 %v380_v29, %v122_v32  ;;  %v193_v34 = vpack.c.bf16 %v122_v32, %v120_v30  ;;  %v235_v32 = vld [vmem:[%s601_s8] sm:$0xf] }
  0xb8   :  { %204 = vmatpush.bf16.msra.mxu1 %v193_v34  ;;  %132 = vadd.xlane.f32.xlu0 %v129_v33  ;;  %v383_v34 = vld [vmem:[%s600_s7] ss:$0 sm:$0xff]  ;;  %s353_s7 = sshll.u32 %s506_s6, 4  ;;  %s354_s7 = int_to_ptr.vmem [resolvable:$true] %s353_s7 }
 0x123   :  { %v131_v35 = vpop.xlane.xlu0 %130 }
 0x124   :  { %134 = vxpose.xlu1.b32.start [1/2] (short) (narrow) %v131_v35, 8 }
 0x12b   :  { %v133_v36 = vpop.xlane.xlu0 %132 }
 0x12c   :  { %135 = vxpose.xlu1.b32.end [2/2] (short) (narrow) %v133_v36, 8 }
 0x1c8   :  { %v150_v41 = vpop.trf.xlu1 }
 0x1c9   :  { %v177_v43 = vperm.slane %v150_v41, 0 }
 0x1cb   :  { %v178_v44 = vmul.f32 %v177_v43, %v176_v42 }
 0x1cd   :  { %v179_v45 = vmul.f32 0.002, %v178_v44 }
 0x1cf   :  { %v180_v46 = vmul.f32 1.442695, %v179_v45 }
 0x1d1   :  { %384 = vpow2.f32 %v180_v46 }
 0x1d7   :  { %v385_v47 = vpop.eup %384 }
 0x1d8   :  { %v183_v48 = vsel %vm182_vm0, %v385_v47, -inf }
 0x1d9   :  { %184 = vmax.xlane.f32.xlu2 %v183_v48 }
 0x24c   :  { %v185_v52 = vpop.xlane.xlu2 %184 }
 0x24d   :  { %v186_v53 = vsub.f32 %v385_v47, %v185_v52 }
 0x24f   :  { %v187_v54 = vmul.f32 1.442695, %v186_v53 }
 0x251   :  { %386 = vpow2.f32 %v187_v54 }
 0x257   :  { %v387_v55 = vpop.eup %386 }
 0x258   :  { %v189_v56 = vsel %vm182_vm0, %v387_v55, 0.0  ;;  %v192_v57 = vpack.c.bf16 %v387_v55, %v387_v55 }
 0x259   :  { %190 = vadd.xlane.f32.xlu2 %v189_v56 }
 0x25a   :  { %366 = vmatmul.msk.bf16.vlgmr.msra.gmra.mxu1 %vm182_vm0, %v192_v57 }
 0x271   :  { %301 = vperm.xlu2 %378, %v235_v32  }
 0x2cc   :  { %v191_v15 = vpop.xlane.xlu2 %190 }
 0x2cd   :  { %388 = vrcp.f32 %v191_v15 }
 0x2d3   :  { %v389_v16 = vpop.eup %388 }
 0x2d4   :  { %v302_v35 = vpop.permute.xlu2 %301 }
 0x2d5   :  { %v304_v36 = vsub.f32 %v383_v34, %v302_v35 }
 0x2d7   :  { %v206_v17 = vpop.f32.mrf.mxu1  ;;  %v305_v37 = vand.u32 2147483647, %v304_v36 }
 0x2d8   :  { %v211_v18 = vmul.f32 %v389_v16, %v206_v17 }
 0x2d9   :  { %v306_v38 = vsub.f32 0.0, %v305_v37 }
 0x2da   :  { %v213_v19 = vmul.f32 1.442695, %v211_v18  ;;  %vm212_vm1 = vcmp.gt.f32.partialorder %v211_v18, 0.0 }
 0x2dc   :  { %390 = vpow2.f32 %v213_v19 }
 0x2df   :  { %v208_v20 = vpop.f32.mrf.mxu1 }
 0x2e2   :  { %v391_v21 = vpop.eup %390 }
 0x2e3   :  { %v367_v22 = vadd.f32 -1.0, %v391_v21 }
 0x2e5   :  { %v216_v23 = vsel %vm212_vm1, %v211_v18, %v367_v22 }
 0x2e6   :  { %v236_v24 = vpack.c.bf16 %v216_v23, %v216_v23 }
 0x2e8   :  { %253 = vmatmul.bf16.vlgmr.msra.gmra.mxu2 %v236_v24 }
 0x36b   :  { %v254_v26 = vpop.f32.mrf.mxu2 }
 0x36c   :  { %v261_v27 = vmul.f32 %v382_v25, %v254_v26  ;;  %v323_v29 = vpack.c.bf16 %v254_v26, %v254_v26 }
 0x36e   :  { %262 = vadd.xlane.f32.xlu0 %v261_v27  ;;  %v330_v30 = vsel %vm328_vm2, %v323_v29, 0 }
 0x36f   :  { %339 = vmatpush.bf16.msra.mxu3 %v330_v30 }
 0x373   :  { %v256_v31 = vpop.f32.mrf.mxu2 }
 0x3e1   :  { %v263_v33 = vpop.xlane.xlu0 %262 }
 0x3e2   :  { %264 = vxpose.xlu0.b32.start.end [1/1] (short) (narrow) %v263_v33, 8 }
 0x449   :  { %379 = vset.pattern.permute.xlu0 %v505_v28 }
 0x486   :  { %v280_v39 = vpop.trf.xlu0 }
 0x487   :  { %v307_v40 = vperm.slane %v280_v39, 0 }
 0x489   :  { %v308_v41 = vmul.f32 %v307_v40, %v306_v38 }
 0x48b   :  { %v309_v42 = vmul.f32 0.002, %v308_v41 }
 0x48d   :  { %v310_v43 = vmul.f32 1.442695, %v309_v42 }
 0x48f   :  { %392 = vpow2.f32 %v310_v43 }
 0x495   :  { %v393_v44 = vpop.eup %392 }
 0x496   :  { %v313_v45 = vsel %vm312_vm3, %v393_v44, -inf }
 0x497   :  { %314 = vmax.xlane.f32.xlu2 %v313_v45 }
 0x50a   :  { %v315_v46 = vpop.xlane.xlu2 %314 }
 0x50b   :  { %v316_v28 = vsub.f32 %v393_v44, %v315_v46 }
 0x50d   :  { %v317_v47 = vmul.f32 1.442695, %v316_v28 }
 0x50f   :  { %394 = vpow2.f32 %v317_v47 }
 0x515   :  { %v395_v48 = vpop.eup %394 }
 0x516   :  { %v319_v49 = vsel %vm312_vm3, %v395_v48, 0.0  ;;  %v322_v50 = vpack.c.bf16 %v395_v48, %v395_v48 }
 0x517   :  { %320 = vadd.xlane.f32.xlu0 %v319_v49 }
 0x518   :  { %368 = vmatmul.msk.bf16.vlgmr.msra.gmra.mxu3 %vm324_vm4, %v322_v50 }
 0x58a   :  { %v321_v51 = vpop.xlane.xlu0 %320 }
 0x58b   :  { %396 = vrcp.f32 %v321_v51 }
 0x591   :  { %v397_v52 = vpop.eup %396 }
 0x59b   :  { %v341_v53 = vpop.f32.mrf.mxu3 }
 0x59c   :  { %v346_v54 = vmul.f32 %v397_v52, %v341_v53 }
 0x59e   :  { %347 = vst [vmem:[#allocation8] sm:$0xf] %v346_v54 }
 0x59f   :  { %358 = dma.vmem_to_hbm [thread:$0]  %s354_s7, 64, %s356_s12, [#allocation4]  }
 0x5a3   :  { %v343_v55 = vpop.f32.mrf.mxu3 }
 0x5a4   :  { %498 = dma.done.wait [#allocation4], 64  }
 0x5a5   :  { %499 = vsyncadd [#allocation4], 4294967232 }
 0x5a6   :  { %363 = vsyncpa [#allocation3], 1 }
 0x5a7   :  { %364 = vsyncpa [#allocation6], 1 }
 0x5a8   :  { %365 = vsyncpa [#allocation4], 1 }

</bundles_post_ra>
